<compile_context>
chip_gen: v7x
topology: tpu7x:2x2x1
jax: 0.10.0
libtpu: 0.0.40
codegen_flags: <defaults>
</compile_context>

<pallas_src>
import functools

import jax
import jax.numpy as jnp
from jax.experimental import pallas as pl
from jax.experimental.pallas import tpu as pltpu


def _round_up(x, m):
    return (x + m - 1) // m * m


def _cdiv(a, b):
    return (a + b - 1) // b


# ----------------------------------------------------------------------------
# Fused kernel: embedding + diff + attentive_reduce_sum readout,
# grid = (core_split, row_tiles_per_core).
# ----------------------------------------------------------------------------
def _fused_kernel(xr_ref, xp_ref, seg_ref, w_emb_ref, w_att_ref, b_ref,
                  diff_ref, pooled_ref, *, num_reactions):
    t = pl.program_id(1)

    # Each core-split owns a private pooled block (index map (c, 0, 0)); it is
    # resident across the "arbitrary" row-tile axis: init once, accumulate.
    @pl.when(t == 0)
    def _init():
        pooled_ref[...] = jnp.zeros_like(pooled_ref)

    # Embedding + difference fused into one MXU matmul (bias-free Linear):
    #   emb(x_prod) - emb(x_react) == (x_prod - x_react) @ W
    diff = jnp.dot(xp_ref[...] - xr_ref[...], w_emb_ref[...],
                   preferred_element_type=jnp.float32)            # (tn, D)
    diff_ref[...] = diff                                          # natural width D

    # attentive_reduce_sum gate: VPU mul + XLU lane-reduce + EUP sigmoid,
    # keeping the MXU free for the segment-pool matmul below.
    score = jax.nn.sigmoid(
        jnp.sum(diff * w_att_ref[...], axis=-1, keepdims=True) + b_ref[0, 0])
    weighted = score * diff                                       # (tn, D)

    # Per-reaction segment-sum: one-hot built from int32 segment ids (padding
    # rows carry seg id -1 -> all-zero column -> contribute nothing).
    # TODO(synk): for num_reactions in the hundreds+, block the reaction axis
    # (or restrict to the seg-id range present in this tile via scalar
    # prefetch) so the one-hot build stays O(few x tn).
    seg = seg_ref[0]                                              # (1, tn) int32
    rxn = jax.lax.broadcasted_iota(jnp.int32,
                                   (num_reactions, seg.shape[-1]), 0)
    onehot = (seg == rxn).astype(jnp.float32)                     # (B, tn)
    pooled_ref[...] += jnp.dot(onehot, weighted,
                               preferred_element_type=jnp.float32
                               ).reshape(pooled_ref.shape)


@functools.partial(jax.jit, static_argnames=("num_reactions", "tile_rows"))
def fused_reaction_encode(x_atom, seg_ids, emb_w, att_w, att_b, *,
                          num_reactions, tile_rows=1024):
    """x_atom: (2*n_react, d_in) raw atom feats (reactant rows then atom-mapped
    product rows).  Returns (atom_diff (n_react, D), pooled (B, D))."""
    na, d_in = x_atom.shape
    n_react = na // 2
    d = emb_w.shape[1]
    f32 = jnp.float32

    # Row tiling: tile size multiple of 8, leading "parallel" core-split axis
    # of size 2 when there is more than one tile (lets v7x use both TCs).
    tn = min(_round_up(tile_rows, 8), _round_up(n_react, 8))
    num_tiles = _cdiv(n_react, tn)
    num_cores = 2 if num_tiles >= 2 else 1
    tiles_per_core = _cdiv(num_tiles, num_cores)
    total_tiles = num_cores * tiles_per_core
    n_pad = total_tiles * tn

    # Single input buffer: reactants in [0, n_pad), products in [n_pad, 2*n_pad).
    # Zero-copy fast path when n_react already fills the tiling exactly.
    x = jnp.asarray(x_atom, f32)
    if n_pad == n_react:
        x_pad = x
    else:
        x_pad = jnp.zeros((2 * n_pad, d_in), f32)
        x_pad = x_pad.at[:n_react].set(x[:n_react])
        x_pad = x_pad.at[n_pad:n_pad + n_react].set(x[n_react:])

    # Lane-oriented segment ids, one (1, tn) row per tile; -1 marks padding rows.
    seg = jnp.full((n_pad,), -1, jnp.int32).at[:n_react].set(
        seg_ids.astype(jnp.int32))
    seg3 = seg.reshape(total_tiles, 1, tn)

    w_emb = jnp.asarray(emb_w, f32)                        # (d_in, D) natural width
    w_att = jnp.reshape(jnp.asarray(att_w, f32), (1, d))   # (1, D)
    b_att = jnp.reshape(jnp.asarray(att_b, f32), (1, 1))   # SMEM scalar

    cost = pl.CostEstimate(
        flops=2 * n_pad * d_in * d + 2 * num_reactions * n_pad * d + 5 * n_pad * d,
        transcendentals=n_pad,
        bytes_accessed=4 * (2 * n_pad * d_in + n_pad + d_in * d + d
                            + n_pad * d + num_cores * num_reactions * d),
    )

    T = tiles_per_core
    diff_p, pooled_p = pl.pallas_call(
        functools.partial(_fused_kernel, num_reactions=num_reactions),
        out_shape=(jax.ShapeDtypeStruct((n_pad, d), f32),
                   jax.ShapeDtypeStruct((num_cores, num_reactions, d), f32)),
        grid=(num_cores, T),
        in_specs=[
            pl.BlockSpec((tn, d_in), lambda c, t: (c * T + t, 0)),          # reactant rows
            pl.BlockSpec((tn, d_in),
                         lambda c, t: (total_tiles + c * T + t, 0)),        # product rows
            pl.BlockSpec((1, 1, tn), lambda c, t: (c * T + t, 0, 0)),       # segment ids
            pl.BlockSpec((d_in, d), lambda c, t: (0, 0)),                   # embedding weight
            pl.BlockSpec((1, d), lambda c, t: (0, 0)),                      # attention weight
            pl.BlockSpec(memory_space=pltpu.MemorySpace.SMEM),              # attention bias
        ],
        out_specs=(
            pl.BlockSpec((tn, d), lambda c, t: (c * T + t, 0)),             # per-atom diff
            pl.BlockSpec((1, num_reactions, d), lambda c, t: (c, 0, 0)),    # pooled partial
        ),
        compiler_params=pltpu.CompilerParams(
            dimension_semantics=("parallel", "arbitrary"),
            vmem_limit_bytes=32 * 1024 * 1024,   # ample at tn<=2048; safe on v7x too
        ),
        cost_estimate=cost,
    )(x_pad, x_pad, seg3, w_emb, w_att, b_att)

    atom_diff = diff_p if n_pad == n_react else diff_p[:n_react]
    pooled = jnp.sum(pooled_p, axis=0)                    # combine per-core partials
    return atom_diff, pooled


# ----------------------------------------------------------------------------
# Encoder wrapper (parameters + metadata handling)
# ----------------------------------------------------------------------------
class ReactionEncoderPallas:
    """ReactionEncoder (default-style config): UnifySize embedding ->
    (conv skipped) -> product-minus-reactant difference -> attentive-sum
    readout, executed as a single fused, tiled Pallas kernel."""

    def __init__(self, in_feats, embedding_size=32, key=jax.random.PRNGKey(0)):
        self.embedding_size = embedding_size
        names = sorted(in_feats.keys())
        keys = jax.random.split(key, len(names) + 1)
        # UnifySize: one Linear(in_size, embedding_size, bias=False) per feature
        # type.  Only the 'atom' weight is consumed under this config (bond /
        # global embeddings only feed the skipped conv layers).
        self.emb_w = {
            name: (
                jax.random.normal(keys[i], (in_feats[name], embedding_size), jnp.float32)
                / jnp.sqrt(jnp.float32(in_feats[name]))
            )
            for i, name in enumerate(names)
        }
        # attentive_reduce_sum gating parameters (Linear(D, 1) + sigmoid)
        self.att_w = 0.1 * jax.random.normal(keys[-1], (embedding_size, 1), jnp.float32)
        self.att_b = jnp.zeros((1, 1), jnp.float32)
        self.node_feats_size = embedding_size
        self.reaction_feats_size = embedding_size

    def __call__(self, feats, metadata, *, tile_rows=1024):
        counts = list(metadata["num_atoms_per_reaction"])
        n_react = sum(counts)
        x_atom = feats["atom"]
        na = x_atom.shape[0]
        assert na % 2 == 0 and na == 2 * n_react, (
            "atom feats must hold reactant rows followed by atom-mapped product rows")
        b = len(counts)
        seg_ids = jnp.repeat(jnp.arange(b, dtype=jnp.int32),
                             jnp.asarray(counts), total_repeat_length=n_react)

        # TODO(synk): GatedGCNConv molecule/reaction conv layers + bond/global
        # UnifySize embeddings require DGL edge-gated message passing over graph
        # adjacency (not provided as arrays); skipped, so the feature width stays
        # at embedding_size and bond/global feats never reach the outputs
        # (pool_bond_feats=False, pool_global_feats=False).
        atom_diff, reaction_feats = fused_reaction_encode(
            x_atom, seg_ids, self.emb_w["atom"], self.att_w, self.att_b,
            num_reactions=b, tile_rows=tile_rows)

        # mlp_diff / mlp_pool are None under this config -> identity
        return {"atom": atom_diff}, reaction_feats


# ----------------------------------------------------------------------------
if __name__ == "__main__":
    def reference(x_atom, counts, enc):
        n = x_atom.shape[0] // 2
        emb = jnp.dot(x_atom.astype(jnp.float32), enc.emb_w["atom"],
                      precision=jax.lax.Precision.HIGHEST)
        diff = emb[n:] - emb[:n]
        score = jax.nn.sigmoid(
            jnp.dot(diff, enc.att_w, precision=jax.lax.Precision.HIGHEST)
            + enc.att_b[0, 0])
        seg = jnp.repeat(jnp.arange(len(counts)), jnp.asarray(counts),
                         total_repeat_length=n)
        pooled = jax.ops.segment_sum(score * diff, seg, num_segments=len(counts))
        return diff, pooled

    key = jax.random.PRNGKey(0)
    k_atom, k_bond, k_glob, k_param, k_atom2 = jax.random.split(key, 5)
    in_feats = {"atom": 16, "bond": 8, "global": 8}
    encoder = ReactionEncoderPallas(in_feats, embedding_size=32, key=k_param)

    # Case 1: 2 reactions x 8 atoms, tile_rows=8 -> grid (2, 1): exercises the
    # core-split 'parallel' axis, per-core pooled partials and the no-pad path.
    counts1 = [8, 8]
    n1 = sum(counts1)
    feats1 = {
        "atom": jax.random.normal(k_atom, (2 * n1, in_feats["atom"]), jnp.float32),
        "bond": jax.random.normal(k_bond, (24, in_feats["bond"]), jnp.float32),
        "global": jax.random.normal(k_glob, (6, in_feats["global"]), jnp.float32),
    }
    meta1 = {"num_atoms_per_reaction": counts1,
             "reactant_num_molecules": [2, 1], "product_num_molecules": [1, 2]}
    rxn_feats1, reaction_feats1 = encoder(feats1, meta1, tile_rows=8)
    jax.block_until_ready((rxn_feats1["atom"], reaction_feats1))
    d1, p1 = reference(feats1["atom"], counts1, encoder)
    assert rxn_feats1["atom"].shape == (n1, 32)
    assert reaction_feats1.shape == (2, 32)
    assert jnp.allclose(rxn_feats1["atom"], d1, atol=2e-2, rtol=2e-2)
    assert jnp.allclose(reaction_feats1, p1, atol=2e-2, rtol=2e-2)

    # Case 2: ragged reactions (5 + 9 = 14 atoms), default tile -> single tile,
    # exercises the row-padded path (padded rows carry seg id -1).
    counts2 = [5, 9]
    n2 = sum(counts2)
    feats2 = {"atom": jax.random.normal(k_atom2, (2 * n2, in_feats["atom"]), jnp.float32)}
    meta2 = {"num_atoms_per_reaction": counts2,
             "reactant_num_molecules": [1, 2], "product_num_molecules": [1, 1]}
    rxn_feats2, reaction_feats2 = encoder(feats2, meta2)
    jax.block_until_ready((rxn_feats2["atom"], reaction_feats2))
    d2, p2 = reference(feats2["atom"], counts2, encoder)
    assert rxn_feats2["atom"].shape == (n2, 32)
    assert reaction_feats2.shape == (2, 32)
    assert jnp.allclose(rxn_feats2["atom"], d2, atol=2e-2, rtol=2e-2)
    assert jnp.allclose(reaction_feats2, p2, atol=2e-2, rtol=2e-2)

    print("KERNEL_OK")
</pallas_src>

<mosaic_0001>
module attributes {stable_mosaic.version = 11 : i64} {
  func.func @_fused_kernel(%arg0: i32, %arg1: i32, %arg2: memref<8x16xf32, #tpu.memory_space<vmem>>, %arg3: memref<8x16xf32, #tpu.memory_space<vmem>>, %arg4: memref<1x1x8xi32, #tpu.memory_space<vmem>>, %arg5: memref<16x32xf32, #tpu.memory_space<vmem>>, %arg6: memref<1x32xf32, #tpu.memory_space<vmem>>, %arg7: memref<1x1xf32, #tpu.memory_space<smem>>, %arg8: memref<8x32xf32, #tpu.memory_space<vmem>>, %arg9: memref<1x2x32xf32, #tpu.memory_space<vmem>>) attributes {dimension_semantics = [#tpu.dimension_semantics<parallel>, #tpu.dimension_semantics<arbitrary>], iteration_bounds = array<i64: 2, 1>, scalar_prefetch = 0 : i64, scratch_operands = 0 : i64, tpu.core_type = #tpu.core_type<tc>, window_params = [{transform_indices = @transform_0, window_bounds = array<i64: 8, 16>}, {transform_indices = @transform_1, window_bounds = array<i64: 8, 16>}, {transform_indices = @transform_2, window_bounds = array<i64: 1, 1, 8>}, {pipeline_mode = #tpu.pipeline_mode<synchronous>, transform_indices = @transform_3, window_bounds = array<i64: 16, 32>}, {pipeline_mode = #tpu.pipeline_mode<synchronous>, transform_indices = @transform_4, window_bounds = array<i64: 1, 32>}, {transform_indices = @transform_5, window_bounds = array<i64: 1, 1>}, {transform_indices = @transform_6, window_bounds = array<i64: 8, 32>}, {transform_indices = @transform_7, window_bounds = array<i64: 1, 2, 32>}]} {
    %c0_i32 = arith.constant 0 : i32
    %0 = arith.cmpi eq, %arg1, %c0_i32 : i32
    %1 = arith.extui %0 : i1 to i32
    %c0_i32_0 = arith.constant 0 : i32
    %2 = arith.cmpi ne, %1, %c0_i32_0 : i32
    scf.if %2 {
      %cst_24 = arith.constant 0.000000e+00 : f32
      %36 = vector.broadcast %cst_24 : f32 to vector<1x2x32xf32>
      %c0_25 = arith.constant 0 : index
      %c0_26 = arith.constant 0 : index
      %c0_27 = arith.constant 0 : index
      %37 = vector.load %arg9[%c0_25, %c0_26, %c0_27] : memref<1x2x32xf32, #tpu.memory_space<vmem>>, vector<1x2x32xf32>
      tpu.vector_store %arg9[%c0_25, %c0_26, %c0_27], %36 {strides = array<i32>} : memref<1x2x32xf32, #tpu.memory_space<vmem>>, vector<1x2x32xf32>,
    } else {
    }
    %c0 = arith.constant 0 : index
    %c0_1 = arith.constant 0 : index
    %3 = vector.load %arg3[%c0, %c0_1] : memref<8x16xf32, #tpu.memory_space<vmem>>, vector<8x16xf32>
    %c0_2 = arith.constant 0 : index
    %c0_3 = arith.constant 0 : index
    %4 = vector.load %arg2[%c0_2, %c0_3] : memref<8x16xf32, #tpu.memory_space<vmem>>, vector<8x16xf32>
    %5 = arith.subf %3, %4 : vector<8x16xf32>
    %c0_4 = arith.constant 0 : index
    %c0_5 = arith.constant 0 : index
    %6 = vector.load %arg5[%c0_4, %c0_5] : memref<16x32xf32, #tpu.memory_space<vmem>>, vector<16x32xf32>
    %cst = arith.constant dense<0.000000e+00> : vector<8x32xf32>
    %7 = tpu.matmul %5, %6, %cst {dimension_numbers = #tpu.dot_dimension_numbers<[1], [0], [0], [1], [0, 0, 1, 1], [], []>} : vector<8x16xf32>, vector<16x32xf32>, vector<8x32xf32> -> vector<8x32xf32>
    %c0_6 = arith.constant 0 : index
    %c0_7 = arith.constant 0 : index
    %8 = vector.load %arg8[%c0_6, %c0_7] : memref<8x32xf32, #tpu.memory_space<vmem>>, vector<8x32xf32>
    tpu.vector_store %arg8[%c0_6, %c0_7], %7 {strides = array<i32>} : memref<8x32xf32, #tpu.memory_space<vmem>>, vector<8x32xf32>,
    %c0_8 = arith.constant 0 : index
    %c0_9 = arith.constant 0 : index
    %9 = vector.load %arg6[%c0_8, %c0_9] : memref<1x32xf32, #tpu.memory_space<vmem>>, vector<1x32xf32>
    %10 = vector.broadcast %9 : vector<1x32xf32> to vector<8x32xf32>
    %11 = arith.mulf %7, %10 : vector<8x32xf32>
    %cst_10 = arith.constant dense<0.000000e+00> : vector<8xf32>
    %12 = vector.multi_reduction <add>, %11, %cst_10 [1] : vector<8x32xf32> to vector<8xf32>
    %13 = vector.shape_cast %12 : vector<8xf32> to vector<8x1xf32>
    %c0_11 = arith.constant 0 : index
    %c0_12 = arith.constant 0 : index
    %14 = memref.load %arg7[%c0_11, %c0_12] : memref<1x1xf32, #tpu.memory_space<smem>>
    %15 = vector.broadcast %14 : f32 to vector<8x1xf32>
    %16 = arith.addf %13, %15 : vector<8x1xf32>
    %17 = arith.negf %16 : vector<8x1xf32>
    %18 = math.exp %17 : vector<8x1xf32>
    %cst_13 = arith.constant 1.000000e+00 : f32
    %19 = vector.broadcast %cst_13 : f32 to vector<8x1xf32>
    %20 = arith.addf %19, %18 : vector<8x1xf32>
    %21 = arith.divf %19, %20 : vector<8x1xf32>
    %22 = vector.broadcast %21 : vector<8x1xf32> to vector<8x32xf32>
    %23 = arith.mulf %22, %7 : vector<8x32xf32>
    %c0_14 = arith.constant 0 : index
    %c0_15 = arith.constant 0 : index
    %c0_16 = arith.constant 0 : index
    %24 = vector.load %arg4[%c0_14, %c0_15, %c0_16] : memref<1x1x8xi32, #tpu.memory_space<vmem>>, vector<1x1x8xi32>
    %25 = vector.shape_cast %24 : vector<1x1x8xi32> to vector<1x8xi32>
    %26 = tpu.iota {dimensions = array<i32: 0>} : vector<2x8xi32>
    %27 = vector.broadcast %25 : vector<1x8xi32> to vector<2x8xi32>
    %28 = arith.cmpi eq, %27, %26 : vector<2x8xi32>
    %29 = arith.extui %28 : vector<2x8xi1> to vector<2x8xi32>
    %30 = arith.sitofp %29 : vector<2x8xi32> to vector<2x8xf32>
    %c0_17 = arith.constant 0 : index
    %c0_18 = arith.constant 0 : index
    %c0_19 = arith.constant 0 : index
    %31 = vector.load %arg9[%c0_17, %c0_18, %c0_19] : memref<1x2x32xf32, #tpu.memory_space<vmem>>, vector<1x2x32xf32>
    %cst_20 = arith.constant dense<0.000000e+00> : vector<2x32xf32>
    %32 = tpu.matmul %30, %23, %cst_20 {dimension_numbers = #tpu.dot_dimension_numbers<[1], [0], [0], [1], [0, 0, 1, 1], [], []>} : vector<2x8xf32>, vector<8x32xf32>, vector<2x32xf32> -> vector<2x32xf32>
    %33 = vector.shape_cast %32 : vector<2x32xf32> to vector<1x2x32xf32>
    %34 = arith.addf %31, %33 : vector<1x2x32xf32>
    %c0_21 = arith.constant 0 : index
    %c0_22 = arith.constant 0 : index
    %c0_23 = arith.constant 0 : index
    %35 = vector.load %arg9[%c0_21, %c0_22, %c0_23] : memref<1x2x32xf32, #tpu.memory_space<vmem>>, vector<1x2x32xf32>
    tpu.vector_store %arg9[%c0_21, %c0_22, %c0_23], %34 {strides = array<i32>} : memref<1x2x32xf32, #tpu.memory_space<vmem>>, vector<1x2x32xf32>,
    return
  }
  func.func @transform_0(%arg0: i32, %arg1: i32) -> (i32, i32) {
    %c1_i32 = arith.constant 1 : i32
    %0 = arith.muli %arg0, %c1_i32 : i32
    %1 = arith.addi %0, %arg1 : i32
    %c0_i32 = arith.constant 0 : i32
    %c0_i32_0 = arith.constant 0 : i32
    return %1, %c0_i32 : i32, i32
  }
  func.func @transform_1(%arg0: i32, %arg1: i32) -> (i32, i32) {
    %c1_i32 = arith.constant 1 : i32
    %0 = arith.muli %arg0, %c1_i32 : i32
    %c2_i32 = arith.constant 2 : i32
    %1 = arith.addi %c2_i32, %0 : i32
    %2 = arith.addi %1, %arg1 : i32
    %c0_i32 = arith.constant 0 : i32
    %c0_i32_0 = arith.constant 0 : i32
    return %2, %c0_i32 : i32, i32
  }
  func.func @transform_2(%arg0: i32, %arg1: i32) -> (i32, i32, i32) {
    %c1_i32 = arith.constant 1 : i32
    %0 = arith.muli %arg0, %c1_i32 : i32
    %1 = arith.addi %0, %arg1 : i32
    %c0_i32 = arith.constant 0 : i32
    %c0_i32_0 = arith.constant 0 : i32
    %c0_i32_1 = arith.constant 0 : i32
    return %1, %c0_i32, %c0_i32_0 : i32, i32, i32
  }
  func.func @transform_3(%arg0: i32, %arg1: i32) -> (i32, i32) {
    %c0_i32 = arith.constant 0 : i32
    %c0_i32_0 = arith.constant 0 : i32
    %c0_i32_1 = arith.constant 0 : i32
    return %c0_i32, %c0_i32_0 : i32, i32
  }
  func.func @transform_4(%arg0: i32, %arg1: i32) -> (i32, i32) {
    %c0_i32 = arith.constant 0 : i32
    %c0_i32_0 = arith.constant 0 : i32
    %c0_i32_1 = arith.constant 0 : i32
    return %c0_i32, %c0_i32_0 : i32, i32
  }
  func.func @transform_5(%arg0: i32, %arg1: i32) -> (i32, i32) {
    %c0_i32 = arith.constant 0 : i32
    %c0_i32_0 = arith.constant 0 : i32
    %c0_i32_1 = arith.constant 0 : i32
    return %c0_i32, %c0_i32_0 : i32, i32
  }
  func.func @transform_6(%arg0: i32, %arg1: i32) -> (i32, i32) {
    %c1_i32 = arith.constant 1 : i32
    %0 = arith.muli %arg0, %c1_i32 : i32
    %1 = arith.addi %0, %arg1 : i32
    %c0_i32 = arith.constant 0 : i32
    %c0_i32_0 = arith.constant 0 : i32
    return %1, %c0_i32 : i32, i32
  }
  func.func @transform_7(%arg0: i32, %arg1: i32) -> (i32, i32, i32) {
    %c0_i32 = arith.constant 0 : i32
    %c0_i32_0 = arith.constant 0 : i32
    %c0_i32_1 = arith.constant 0 : i32
    return %arg0, %c0_i32, %c0_i32_0 : i32, i32, i32
  }
}

</mosaic_0001>

<bundles_post_ra>
// kernel: fused_reaction_encode.1
= control target key start
LH: loop header
LB: loop body
LE: loop exit
PB: predicated region body
PF: predicated region fallthrough
CT: control target
= control target key end

     0   :  { %s1064_s0 = inlined_call_operand.vmem [shape: f32[32,16], index: 0, kind: input, shape index: {}, may-alias: {0,1}]   ;;  %s1065_s1 = inlined_call_operand.vmem [shape: f32[32,16], index: 1, kind: input, shape index: {}, may-alias: {0,1}]   ;;  %s1066_s2 = inlined_call_operand.vmem [shape: s32[2,1,8], index: 2, kind: input, shape index: {}]   ;;  %s1067_s3 = inlined_call_operand.vmem [shape: f32[16,32], index: 3, kind: input, shape index: {}]   ;;  %s1068_s4 = inlined_call_operand.vmem [shape: f32[1,32], index: 4, kind: input, shape index: {}]   ;;  %s1069_s5 = inlined_call_operand.<no memory space> [shape: f32[1,1], index: 5, kind: input, shape index: {}]   ;;  %s1070_s6 = inlined_call_operand.hbm [shape: f32[16,32], index: 6, kind: output, shape index: {0}]   ;;  %s1071_s7 = inlined_call_operand.vmem [shape: f32[2,2,32], index: 7, kind: output, shape index: {1}]  }
   0x1   :  { %13 = sst [smem:[#allocation2]] %s1069_s5 }
   0x2   :  { %14 = vsyncpa [#allocation4], 0 }
   0x3   :  { %16 = vsyncpa [#allocation4 + $0x1], 0  ;;  %s919_s26 = smov 0   ;;  %s921_s27 = smov 0  }
   0x4   :  { %s923_s28 = smov 0   ;;  %s925_s29 = smov 0  }
   0x5   :  { %s927_s30 = smov 0   ;;  %s929_s8 = smov 0  }
   0x6 LB: > { %s691_s5 = sadd.s32 4294967295, %s870_s8   ;;  %s692_s9 = sadd.s32 4294967294, %s870_s8   ;;  %s870_s8 = sphi %s929_s8, %s22_s8   ;;  %s866_s30 = sphi %s927_s30, %s1078_s30   ;;  %s862_s29 = sphi %s925_s29, %s1077_s29   ;;  %s858_s28 = sphi %s923_s28, %s1076_s28   ;;  %s854_s27 = sphi %s921_s27, %s1075_s27   ;;  %s850_s26 = sphi %s919_s26, %s1074_s26  }
   0x7   : > { %s34_s10 = sadd.s32 1, %s866_s30  ;;  %s192_s11 = sadd.s32 1, %s858_s28 }
   0x8   : > { %p36_p0 = scmp.ge.s32.totalorder %s34_s10, 2  ;;  %p202_p1 = scmp.ne.s32.totalorder %s858_s28, %s854_s27 }
   0x9   : > { %p203_p2 = scmp.eq.s32.totalorder %s691_s5, 1  ;;  %p208_p3 = scmp.ne.s32.totalorder %s854_s27, %s850_s26 }
   0xa   : > { %s1080_s10 = smov (%p36_p0, %s34_s10), 0  ;;  %p209_p5 = scmp.eq.s32.totalorder %s692_s9, 1 }
   0xb   : > { %p959_p4 = por %p203_p2, %p202_p1  ;;  %s189_s13 = ssub.s32 %s866_s30, %s1080_s10 }
   0xc   : > { %p695_p6 = scmp.ge.s32.totalorder %s870_s8, 1  ;;  %p190_p7 = scmp.eq.s32.totalorder %s189_s13, 0 }
   0xd   : > { %p966_p8 = por %p209_p5, %p208_p3  ;;  %p290_p9 = scmp.lt.s32.totalorder %s870_s8, 3 }
   0xe   : > { %s972_s15 = scalar_select %p190_p7, %s858_s28, %s192_s11  }
   0xf   : > { %p291_p10 = pnand %p695_p6, %p290_p9 }
  0x10   : > { %v369_v0 = vld [vmem:[%s1067_s3] sm:$0xff] (!%p291_p10)  ;;  %v370_v1 = vld [vmem:[%s1067_s3 + $0x8] sm:$0xff] (!%p291_p10)  ;;  %p337_p11 = scmp.lt.s32.totalorder (!%p291_p10), %s862_s29, 3  ;;  %v872_v2 = vmov (!%p291_p10), 0.0|0.0   ;;  %vm873_vm0 = vmmov (!%p291_p10), 0   ;;  %v874_v4 = vmov (!%p291_p10), 0.0   ;;  %v469_v19 = vlaneseq (!%p291_p10) }
  0x11   : > { %294 = sbr.rel (%p291_p10) target bundleno = 635 (0x27b), region = 44  ;;  %727 = vmatprep.subr.bf16.mxu0 (!%p291_p10), %v872_v2  ;;  %v728_v3 = vpack.c.bf16 (!%p291_p10), %v370_v1, %v369_v0  ;;  %719 = vmatprep.mubr.msk.f32.mxu0 (!%p291_p10), %vm873_vm0, %v874_v4  ;;  %s342_s20 = sadd.s32 (!%p291_p10), 2, %s862_s29  ;;  %vm371_vm1 = vcmask (!%p291_p10), 130048   ;;  %vm445_vm2 = vcmask (!%p291_p10), 261120   ;;  %v701_v8 = vld [vmem:[%s1068_s4] ss:$0 sm:$0xff] (!%p291_p10) }
  0x12   : > { %722 = vmatprep.subr.mxu1 (!%p291_p10), %v874_v4  ;;  %724 = vmatprep.mubr.msk.f32.mxu1 (!%p291_p10), %vm873_vm0, %v874_v4  ;;  %p344_p12 = scmp.lt.s32.totalorder (!%p291_p10), %s342_s20, 3  ;;  %s327_s16 = sand.u32 (!%p291_p10), 1, %s854_s27   ;;  %vm364_vm3 = vcmask (!%p291_p10), 254976   ;;  %v470_v20 = vshrl.u32 (!%p291_p10), %v469_v19, 7  ;;  %vm479_vm5 = vcmask (!%p291_p10), 64512  }
  0x13   : > { %729 = vmatpush3.bf16.msra.mxu0 (!%p291_p10), %v728_v3  ;;  %s992_s17 = sshll.u32 (!%p291_p10), %s327_s16, 3  ;;  %p351_p13 = scmp.lt.s32.totalorder (!%p291_p10), %s862_s29, 1 }
  0x14   : > { %s707_s18 = sshll.u32 (!%p291_p10), %s862_s29, 7  ;;  %s875_s9 = smov (!%p291_p10), [#allocation3]  }
  0x15   : > { %s1018_s24 = scalar_lea.hbm (!%p291_p10), %s1070_s6, %s707_s18  ;;  %s796_s11 = sshll.u32 (!%p291_p10), %s875_s9, 4  ;;  %s797_s11 = int_to_ptr.vmem [resolvable:$false] %s796_s11 }
  0x18   : > { %s338_s21 = scalar_select %p337_p11, %s862_s29, 3 }
  0x19   : > { %s1082_s20 = smov (!%p344_p12, %s342_s20), 3 }
  0x1a   : > { %s697_s22 = sshll.u32 %s338_s21, 3  ;;  %s698_s5 = sshll.u32 %s1082_s20, 3 }
  0x1b   : > { %s340_s25 = scalar_lea.vmem %s1064_s0, %s697_s22  ;;  %s347_s13 = scalar_lea.vmem %s1065_s1, %s698_s5 }
  0x1c   : > { %v367_v5 = vld [vmem:[%s340_s25] sm:$0xff]  ;;  %s329_s20 = scalar_lea.vmem [#allocation3], %s992_s17  ;;  %s458_s5 = sld [smem:[#allocation2]] }
  0x1d   : > { %v366_v6 = vld [vmem:[%s347_s13] sm:$0xff]  ;;  %s352_s21 = scalar_select %p351_p13, %s862_s29, 1 }
  0x1e   : > { %v368_v7 = vsub.f32 %v366_v6, %v367_v5  ;;  %s575_s19 = sshll.u32 %s329_s20, 4  ;;  %s576_s19 = int_to_ptr.vmem [resolvable:$true] %s575_s19 }
  0x1f   : > { %s699_s22 = sshll.u32 %s352_s21, 1  ;;  %s353_s13 = scalar_lea.vmem %s1066_s2, %s352_s21 }
  0x20   : > { %720 = vmatmul.mubr.msk.f32.vlgmr.msra.gmra.mrb[0].mxu0 %vm371_vm1, %v368_v7  ;;  %s1005_s25 = scalar_lea.vmem %s1071_s7, %s699_s22  ;;  %v703_v21 = vld [vmem:[%s353_s13] ss:$0 sm:$0xff]  ;;  %s557_s21 = scalar_lea.sflag [#allocation4], %s327_s16 }
  0x21   : > { %365 = vst.msk [vmem:[%s1005_s25] sm:$0x3] %vm364_vm3, %v874_v4  ;;  %vm475_vm4 = vcmp.eq.s32.totalorder %v703_v21, %v470_v20  ;;  %s798_s13 = scalar_lea.vmem %s797_s11, 256  ;;  %p799_p3 = scmp.lt.s32.totalorder %s576_s19, %s797_s11 }
  0x22   : > { %v459_v13 = vstv %s458_s5  ;;  %v704_v24 = vsel %vm475_vm4, 1.0, %v874_v4  ;;  %s792_s5 = scalar_lea.vmem %s576_s19, 128 }
  0x23   : > { %p793_p0 = scmp.ne.s32.totalorder %s576_s19, %s792_s5  ;;  %p800_p5 = scmp.lt.s32.totalorder %s798_s13, %s792_s5 }
  0x25   : > { %p794_p1 = pnand %p793_p0, %p959_p4  ;;  %p801_p6 = por %p800_p5, %p799_p3 }
  0x27   : > { %p795_p2 = pneg %p794_p1 }
  0x29   : > { %p802_p7 = pnand %p801_p6, %p795_p2 }
  0xf3   : > { %v441_v9 = vpop.f32.mrb[0].mxu0 }
  0xf4   : > { %v721_v10 = vpop.f32.mrb[1].mxu0  ;;  %446 = vst.msk [vmem:[%s329_s20] sm:$0xff] %vm445_vm2, %v441_v9  ;;  %v454_v11 = vmul.f32 %v701_v8, %v441_v9 }
  0xf6   : > { %v455_v12 = vsel %vm445_vm2, %v454_v11, 0.0 }
  0xf7   : > { %456 = vadd.xlane.f32.xlu0 %v455_v12 }
 0x184   : > { %v457_v14 = vpop.xlane.xlu0 %456 }
 0x185   : > { %v460_v15 = vadd.f32 %v459_v13, %v457_v14 }
 0x187   : > { %v702_v16 = vmul.f32 -1.442695, %v460_v15 }
 0x189   : > { %788 = vpow2.f32 %v702_v16 }
 0x193   : > { %v789_v17 = vpop.eup %788 }
 0x194   : > { %v464_v18 = vadd.f32 1.0, %v789_v17 }
 0x196   : > { %790 = vrcp.f32 %v464_v18 }
 0x1a0   : > { %v791_v22 = vpop.eup %790 }
 0x1a1   : > { %v467_v23 = vmul.f32 %v791_v22, %v441_v9 }
 0x1a3   : > { %723 = vmatpush3.msra.mxu1 %v467_v23 }
 0x1a4   : > { %725 = vmatmul.mubr.msk.f32.vlgmr.msra.gmra.mrb[0].mxu1 %vm479_vm5, %v704_v24 }
 0x1a5   : > { %805 = shalt.err (!%p802_p7)
}
 0x1a6   : > { %s806_s29 = scalar_lea.hbm %s1018_s24, 128  ;;  %s810_s20 = scalar_lea.hbm %s1070_s6, 256 }
 0x1a7   : > { %p807_p9 = scmp.ne.s32.totalorder %s1018_s24, %s806_s29  ;;  %p811_p12 = scmp.lt.u32.totalorder %s1018_s24, %s1070_s6 }
 0x1a8   : > { %p812_p13 = scmp.lt.u32.totalorder %s810_s20, %s806_s29  ;;  %p814_p1 = scmp.lt.u32.totalorder %s806_s29, %s1018_s24 }
 0x1a9   : > { %p808_p10 = pnand %p807_p9, %p959_p4 }
 0x1aa   : > { %p813_p0 = por %p812_p13, %p811_p12 }
 0x1ab   : > { %p809_p11 = pneg %p808_p10 }
 0x1ac   : > { %p815_p2 = por %p814_p1, %p813_p0 }
 0x1ae   : > { %p816_p3 = pnand %p815_p2, %p809_p11 }
 0x1b0   : > { %819 = shalt.err (!%p816_p3)
}
 0x1b1   : > { %730 = dma.vmem_to_hbm [thread:$0]  (%p959_p4), %s576_s19, 128, %s1018_s24, %s557_s21   ;;  %v478_v25 = vld [vmem:[%s1005_s25] sm:$0x3] }
 0x277   : > { %v549_v26 = vpop.f32.mrb[0].mxu1 }
 0x278   : > { %v553_v27 = vadd.f32 %v549_v26, %v478_v25  ;;  %v726_v28 = vpop.f32.mrb[1].mxu1 }
 0x27a   : > { %555 = vst.msk [vmem:[%s1005_s25] sm:$0x3] %vm364_vm3, %v553_v27 }
 0x27b PF: > { %p736_p5 = scmp.ge.s32.totalorder %s870_s8, 2  ;;  %s590_s23 = sand.u32 1, %s850_s26  }
 0x27c   : > { %s591_s5 = scalar_lea.sflag [#allocation4], %s590_s23 }
 0x27d   : > { %p733_p6 = pnand %p736_p5, %p966_p8 }
 0x27f   : > { %845 = dma.done.wait (!%p733_p6), %s591_s5, 128  }
 0x280   : > { %847 = vsyncadd (!%p733_p6), %s591_s5, 4294967168  ;;  %s22_s8 = sadd.s32 1, %s870_s8   ;;  %s1074_s26 = smov %s854_s27 }
 0x281   : > { %p19_p4 = scmp.ge.s32.totalorder %s22_s8, 4   ;;  %s1075_s27 = smov %s858_s28 }
 0x282   : > { %s1076_s28 = smov %s972_s15  ;;  %s1077_s29 = smov %s866_s30 }
 0x283   : > { %s1078_s30 = smov %s1080_s10  ;;  %21 = sbr.rel (!%p19_p4) target bundleno = 6 (0x6), region = 101 }
 0x28a   :  { %603 = vsyncpa [#allocation4], 1 }
 0x28b   :  { %605 = vsyncpa [#allocation4 + $0x1], 1 }

</bundles_post_ra>
